<compile_context>
chip_gen: v7x
topology: tpu7x:2x2x1
jax: 0.10.0
libtpu: 0.0.40
codegen_flags: <defaults>
</compile_context>

<pallas_src>
import functools

import jax
import jax.numpy as jnp
from jax import lax
from jax.experimental import pallas as pl
from jax.experimental.pallas import tpu as pltpu


# ----------------------------- Pallas kernel --------------------------------

# Row layout of the merged per-layer (9, D) bias / LayerNorm slab.
_ROW_BQ, _ROW_BK, _ROW_BV, _ROW_BO = 0, 1, 2, 3
_ROW_LN1G, _ROW_LN1B = 4, 5
_ROW_B2 = 6
_ROW_LN2G, _ROW_LN2B = 7, 8
_NUM_PARAM_ROWS = 9


def _layernorm(x, g, b, eps=1e-5):
  mu = jnp.mean(x, axis=-1, keepdims=True)
  var = jnp.mean((x - mu) ** 2, axis=-1, keepdims=True)
  return (x - mu) * lax.rsqrt(var + eps) * g + b


def _encoder_stack_kernel(
    src_ref, pos_ref,
    wqk_ref, wv_ref, wo_ref, w1_ref, w2_ref, pvec_ref, b1_ref,
    out_ref,
    ctx_ref,
    *, num_heads: int, seq: int, q_chunk: int,
):
  """One (batch element, layer) per grid step; activations stay resident."""
  layer = pl.program_id(1)

  # First layer of each batch element: seed the resident activation block.
  # (Output VMEM blocks are never preloaded from HBM, so this copy is the
  #  only way to initialize the resident slab; src is HBM-aliased to out.)
  @pl.when(layer == 0)
  def _():
    out_ref[...] = src_ref[...]

  x = out_ref[...].astype(jnp.float32)            # (S, D)
  pos = pos_ref[...].astype(jnp.float32)
  S, D = x.shape
  H = num_heads
  dh = D // H
  scale = 1.0 / float(dh) ** 0.5

  mm_dtype = wqk_ref.dtype                        # bf16 by default (all gens)

  def mm(a, w):                                   # MXU matmul, f32 accumulate
    return jnp.dot(a.astype(mm_dtype), w, preferred_element_type=jnp.float32)

  prm = pvec_ref[...].astype(jnp.float32)         # (9, D) merged bias/LN slab
  bq, bk = prm[_ROW_BQ:_ROW_BQ + 1], prm[_ROW_BK:_ROW_BK + 1]
  bv, bo = prm[_ROW_BV:_ROW_BV + 1], prm[_ROW_BO:_ROW_BO + 1]
  ln1_g, ln1_b = prm[_ROW_LN1G:_ROW_LN1G + 1], prm[_ROW_LN1B:_ROW_LN1B + 1]
  b2 = prm[_ROW_B2:_ROW_B2 + 1]
  ln2_g, ln2_b = prm[_ROW_LN2G:_ROW_LN2G + 1], prm[_ROW_LN2B:_ROW_LN2B + 1]
  b1 = b1_ref[...].astype(jnp.float32)            # (1, F)

  # --- fused Q|K projection (one (S,D)x(D,2D) matmul); V uses src (no pos) ---
  qk_in = x + pos
  qk = mm(qk_in, wqk_ref[...])                    # (S, 2D), f32
  # Cast to the matmul dtype ONCE (not per head slice / per chunk).
  q = (qk[:, :D] + bq).astype(mm_dtype)
  k = (qk[:, D:] + bk).astype(mm_dtype)
  v = (mm(x, wv_ref[...]) + bv).astype(mm_dtype)  # (S, D)

  def split_heads(t):
    # (rows, D) -> (H, rows, dh): lane slices + leading-axis stack (avoids an
    # in-kernel lane-dim reshape/transpose).  Done once per tensor per step.
    return jnp.stack([t[:, h * dh:(h + 1) * dh] for h in range(H)], axis=0)

  kh = split_heads(k)                             # (H, S, dh)
  vh = split_heads(v)                             # (H, S, dh)

  # --- self attention, tiled over query chunks (bounds scores to (H,tq,S)) ---
  # Chunk bounds are Python ints -> all slices below are static.
  for c in range(seq // q_chunk):
    r0 = c * q_chunk
    qc = split_heads(q[r0:r0 + q_chunk, :])       # (H, tq, dh)
    s = jnp.einsum("hqd,hkd->hqk", qc, kh,
                   preferred_element_type=jnp.float32) * scale   # (H, tq, S)
    m = jnp.max(s, axis=-1, keepdims=True)
    e = jnp.exp(s - m)
    p = e * pl.reciprocal(jnp.sum(e, axis=-1, keepdims=True), approx=True)
    o = jnp.einsum("hqk,hkd->hqd", p.astype(mm_dtype), vh,
                   preferred_element_type=jnp.float32)           # (H, tq, dh)
    # Heads contiguous along the lane axis -> (tq, D); write into scratch.
    ctx_ref[r0:r0 + q_chunk, :] = jnp.concatenate(
        [o[h] for h in range(H)], axis=-1)

  # Single output projection for all heads.
  attn = mm(ctx_ref[...], wo_ref[...]) + bo

  # --- residual + LayerNorm1 ---
  x1 = _layernorm(x + attn, ln1_g, ln1_b)

  # --- feed forward (ReLU) ---
  h1 = jnp.maximum(mm(x1, w1_ref[...]) + b1, 0.0)
  ffn = mm(h1, w2_ref[...]) + b2

  # --- residual + LayerNorm2 ---
  y = _layernorm(x1 + ffn, ln2_g, ln2_b)

  out_ref[...] = y.astype(out_ref.dtype)


# ------------------------------ wrapper --------------------------------------


def _default_vmem_limit_bytes():
  """Generation-aware VMEM request: ~100 MiB on v5e/v6e, ~48 MiB on v7x."""
  try:
    cap = int(pltpu.get_tpu_info().vmem_capacity_bytes)
  except Exception:
    cap = 64 * 1024 * 1024
  return int(min(max(cap - 16 * 1024 * 1024, 32 * 1024 * 1024),
                 100 * 1024 * 1024))


def transformer_encoder_pallas(src_sbd, pos_sbd, layer_params, num_heads,
                               *, matmul_dtype=jnp.bfloat16, q_chunk=256):
  """Stack of DETR encoder layers.  src_sbd / pos_sbd: (S, B, D) like PyTorch.

  Single pallas_call, grid = (B, L):
    * batch axis "parallel" (feeds both v7x TensorCores),
    * layer axis "arbitrary" (sequential), streaming one layer's weights per
      step while the per-batch (S, D) activation slab stays resident in VMEM
      (constant block index across layers -> one HBM writeback per batch).
  src is HBM-aliased to the output (buffer donated).
  """
  S, B, D = src_sbd.shape
  L = len(layer_params)
  F = layer_params[0]["b1"].shape[-1]
  assert D % num_heads == 0, "d_model must be divisible by nhead"

  src = jnp.transpose(src_sbd, (1, 0, 2))                         # (B, S, D)
  pos = jnp.transpose(pos_sbd, (1, 0, 2))                         # (B, S, D)

  # Stack per-layer weights along a leading layer axis; fuse q|k weights.
  wqk = jnp.stack([jnp.concatenate([lp["wq_t"], lp["wk_t"]], axis=1)
                   for lp in layer_params]).astype(matmul_dtype)  # (L, D, 2D)
  wv = jnp.stack([lp["wv_t"] for lp in layer_params]).astype(matmul_dtype)
  wo = jnp.stack([lp["wo_t"] for lp in layer_params]).astype(matmul_dtype)
  w1 = jnp.stack([lp["w1_t"] for lp in layer_params]).astype(matmul_dtype)
  w2 = jnp.stack([lp["w2_t"] for lp in layer_params]).astype(matmul_dtype)
  # Merge all D-wide per-layer vectors (biases + LN affine) into one slab.
  pvec = jnp.stack([jnp.concatenate(
      [lp["bq"], lp["bk"], lp["bv"], lp["bo"],
       lp["ln1_g"], lp["ln1_b"], lp["b2"], lp["ln2_g"], lp["ln2_b"]], axis=0)
      for lp in layer_params])                                    # (L, 9, D)
  b1 = jnp.stack([lp["b1"] for lp in layer_params])               # (L, 1, F)

  # Query-chunk size: static, divides S (fall back to full S at small/odd S).
  q_chunk = min(q_chunk, S)
  if S % q_chunk != 0:
    q_chunk = S   # TODO(synk): support ragged query chunks for odd S.

  def per_batch(shape):
    # Constant block index across the layer axis -> resident per batch elem.
    return pl.BlockSpec((None,) + shape,
                        lambda b, l, _n=len(shape): (b,) + (0,) * _n)

  def per_layer(shape):
    # Leading (squeezed) layer axis streamed by the BlockSpec pipeline.
    return pl.BlockSpec((None,) + shape,
                        lambda b, l, _n=len(shape): (l,) + (0,) * _n)

  kernel = functools.partial(_encoder_stack_kernel,
                             num_heads=num_heads, seq=S, q_chunk=q_chunk)

  out = pl.pallas_call(
      kernel,
      out_shape=jax.ShapeDtypeStruct((B, S, D), src_sbd.dtype),
      grid=(B, L),
      in_specs=[
          per_batch((S, D)),                 # src (seeds out_ref at layer 0)
          per_batch((S, D)),                 # pos
          per_layer((D, 2 * D)),             # fused q|k weight
          per_layer((D, D)),                 # v weight
          per_layer((D, D)),                 # attention output projection
          per_layer((D, F)),                 # ffn linear1
          per_layer((F, D)),                 # ffn linear2
          per_layer((_NUM_PARAM_ROWS, D)),   # merged biases + LN params
          per_layer((1, F)),                 # ffn bias1
      ],
      out_specs=per_batch((S, D)),
      scratch_shapes=[pltpu.VMEM((S, D), jnp.float32)],   # attention context
      input_output_aliases={0: 0},           # donate src HBM buffer to output
      compiler_params=pltpu.CompilerParams(
          dimension_semantics=("parallel", "arbitrary"),
          vmem_limit_bytes=_default_vmem_limit_bytes(),
      ),
  )(src, pos, wqk, wv, wo, w1, w2, pvec, b1)

  # final `norm` is None in this configuration
  return jnp.transpose(out, (1, 0, 2))


# ------------------------- pure-JAX reference ---------------------------------


def _encoder_layer_ref(x, pos, lp, num_heads):
  B, S, D = x.shape
  dh = D // num_heads
  qk_in = x + pos
  q = qk_in @ lp["wq_t"] + lp["bq"]
  k = qk_in @ lp["wk_t"] + lp["bk"]
  v = x @ lp["wv_t"] + lp["bv"]

  def split(t):
    return t.reshape(B, S, num_heads, dh).transpose(0, 2, 1, 3)

  qh, kh, vh = split(q), split(k), split(v)
  scores = jnp.einsum("bhqd,bhkd->bhqk", qh, kh) / (dh ** 0.5)
  p = jax.nn.softmax(scores, axis=-1)
  o = jnp.einsum("bhqk,bhkd->bhqd", p, vh)
  o = o.transpose(0, 2, 1, 3).reshape(B, S, D)
  attn_out = o @ lp["wo_t"] + lp["bo"]

  def layernorm(t, g, b):
    mu = jnp.mean(t, axis=-1, keepdims=True)
    var = jnp.mean((t - mu) ** 2, axis=-1, keepdims=True)
    return (t - mu) * lax.rsqrt(var + 1e-5) * g + b

  x = layernorm(x + attn_out, lp["ln1_g"], lp["ln1_b"])
  ffn = jnp.maximum(x @ lp["w1_t"] + lp["b1"], 0.0) @ lp["w2_t"] + lp["b2"]
  return layernorm(x + ffn, lp["ln2_g"], lp["ln2_b"])


def transformer_encoder_ref(src_sbd, pos_sbd, layer_params, num_heads):
  out = jnp.transpose(src_sbd, (1, 0, 2))
  pos = jnp.transpose(pos_sbd, (1, 0, 2))
  for lp in layer_params:
    out = _encoder_layer_ref(out, pos, lp, num_heads)
  return jnp.transpose(out, (1, 0, 2))


# ------------------------------ param init ------------------------------------


def init_layer_params(key, d_model, dim_ff):
  ks = jax.random.split(key, 6)
  std = 0.02
  return {
      # weights stored pre-transposed so the kernel computes x @ W
      "wq_t": (std * jax.random.normal(ks[0], (d_model, d_model))).astype(jnp.float32),
      "wk_t": (std * jax.random.normal(ks[1], (d_model, d_model))).astype(jnp.float32),
      "wv_t": (std * jax.random.normal(ks[2], (d_model, d_model))).astype(jnp.float32),
      "wo_t": (std * jax.random.normal(ks[3], (d_model, d_model))).astype(jnp.float32),
      "bq": jnp.zeros((1, d_model), jnp.float32),
      "bk": jnp.zeros((1, d_model), jnp.float32),
      "bv": jnp.zeros((1, d_model), jnp.float32),
      "bo": jnp.zeros((1, d_model), jnp.float32),
      "ln1_g": jnp.ones((1, d_model), jnp.float32),
      "ln1_b": jnp.zeros((1, d_model), jnp.float32),
      "w1_t": (std * jax.random.normal(ks[4], (d_model, dim_ff))).astype(jnp.float32),
      "b1": jnp.zeros((1, dim_ff), jnp.float32),
      "w2_t": (std * jax.random.normal(ks[5], (dim_ff, d_model))).astype(jnp.float32),
      "b2": jnp.zeros((1, d_model), jnp.float32),
      "ln2_g": jnp.ones((1, d_model), jnp.float32),
      "ln2_b": jnp.zeros((1, d_model), jnp.float32),
  }


# --------------------------------- main ---------------------------------------

if __name__ == "__main__":
  # small, module-consistent shapes (validate; do NOT profile at these shapes)
  S, B, D = 8, 2, 32          # seq, batch, d_model
  NUM_HEADS = 4
  DIM_FF = 64
  NUM_LAYERS = 2

  key = jax.random.PRNGKey(0)
  k_src, k_pos, k_params = jax.random.split(key, 3)
  src = jax.random.normal(k_src, (S, B, D), jnp.float32)   # (S, B, D) like torch
  pos = jax.random.normal(k_pos, (S, B, D), jnp.float32)

  layer_keys = jax.random.split(k_params, NUM_LAYERS)
  layer_params = [init_layer_params(lk, D, DIM_FF) for lk in layer_keys]

  ref = jax.block_until_ready(
      transformer_encoder_ref(src, pos, layer_params, NUM_HEADS))

  # f32-operand path: strict-parity check vs the f32 reference.
  out_f32 = jax.block_until_ready(
      transformer_encoder_pallas(src, pos, layer_params, NUM_HEADS,
                                 matmul_dtype=jnp.float32))
  assert out_f32.shape == (S, B, D)
  assert jnp.allclose(out_f32, ref, atol=2e-3, rtol=2e-3), \
      "f32 kernel mismatch vs JAX reference"

  # bf16 matmul path (default; all generations run bf16 MXU operands with
  # f32 accumulation): looser tolerance.
  out_bf16 = jax.block_until_ready(
      transformer_encoder_pallas(src, pos, layer_params, NUM_HEADS))
  assert jnp.allclose(out_bf16, ref, atol=2e-2, rtol=2e-2), \
      "bf16-matmul kernel mismatch vs JAX reference"

  print("KERNEL_OK")
</pallas_src>

<mosaic_0001>
module attributes {stable_mosaic.version = 11 : i64} {
  func.func @_encoder_stack_kernel(%arg0: i32, %arg1: i32, %arg2: memref<1x8x32xf32, #tpu.memory_space<vmem>>, %arg3: memref<1x8x32xf32, #tpu.memory_space<vmem>>, %arg4: memref<1x32x64xf32, #tpu.memory_space<vmem>>, %arg5: memref<1x32x32xf32, #tpu.memory_space<vmem>>, %arg6: memref<1x32x32xf32, #tpu.memory_space<vmem>>, %arg7: memref<1x32x64xf32, #tpu.memory_space<vmem>>, %arg8: memref<1x64x32xf32, #tpu.memory_space<vmem>>, %arg9: memref<1x9x32xf32, #tpu.memory_space<vmem>>, %arg10: memref<1x1x64xf32, #tpu.memory_space<vmem>>, %arg11: memref<1x8x32xf32, #tpu.memory_space<vmem>>, %arg12: memref<8x32xf32, #tpu.memory_space<vmem>>) attributes {dimension_semantics = [#tpu.dimension_semantics<parallel>, #tpu.dimension_semantics<arbitrary>], iteration_bounds = array<i64: 2, 2>, scalar_prefetch = 0 : i64, scratch_operands = 1 : i64, tpu.core_type = #tpu.core_type<tc>, window_params = [{transform_indices = @transform_0, window_bounds = array<i64: 1, 8, 32>}, {transform_indices = @transform_1, window_bounds = array<i64: 1, 8, 32>}, {transform_indices = @transform_2, window_bounds = array<i64: 1, 32, 64>}, {transform_indices = @transform_3, window_bounds = array<i64: 1, 32, 32>}, {transform_indices = @transform_4, window_bounds = array<i64: 1, 32, 32>}, {transform_indices = @transform_5, window_bounds = array<i64: 1, 32, 64>}, {transform_indices = @transform_6, window_bounds = array<i64: 1, 64, 32>}, {transform_indices = @transform_7, window_bounds = array<i64: 1, 9, 32>}, {transform_indices = @transform_8, window_bounds = array<i64: 1, 1, 64>}, {transform_indices = @transform_9, window_bounds = array<i64: 1, 8, 32>}]} {
    %c0_i32 = arith.constant 0 : i32
    %0 = arith.cmpi eq, %arg1, %c0_i32 : i32
    %1 = arith.extui %0 : i1 to i32
    %c0_i32_0 = arith.constant 0 : i32
    %2 = arith.cmpi ne, %1, %c0_i32_0 : i32
    scf.if %2 {
      %c0_54 = arith.constant 0 : index
      %c0_55 = arith.constant 0 : index
      %c0_56 = arith.constant 0 : index
      %153 = vector.load %arg2[%c0_54, %c0_55, %c0_56] : memref<1x8x32xf32, #tpu.memory_space<vmem>>, vector<1x8x32xf32>
      %154 = vector.shape_cast %153 : vector<1x8x32xf32> to vector<8x32xf32>
      %c0_57 = arith.constant 0 : index
      %c0_58 = arith.constant 0 : index
      %c0_59 = arith.constant 0 : index
      %155 = vector.load %arg11[%c0_57, %c0_58, %c0_59] : memref<1x8x32xf32, #tpu.memory_space<vmem>>, vector<1x8x32xf32>
      %156 = vector.shape_cast %155 : vector<1x8x32xf32> to vector<8x32xf32>
      %157 = vector.shape_cast %154 : vector<8x32xf32> to vector<1x8x32xf32>
      tpu.vector_store %arg11[%c0_57, %c0_58, %c0_59], %157 {strides = array<i32>} : memref<1x8x32xf32, #tpu.memory_space<vmem>>, vector<1x8x32xf32>,
    } else {
    }
    %c0 = arith.constant 0 : index
    %c0_1 = arith.constant 0 : index
    %c0_2 = arith.constant 0 : index
    %3 = vector.load %arg11[%c0, %c0_1, %c0_2] : memref<1x8x32xf32, #tpu.memory_space<vmem>>, vector<1x8x32xf32>
    %4 = vector.shape_cast %3 : vector<1x8x32xf32> to vector<8x32xf32>
    %c0_3 = arith.constant 0 : index
    %c0_4 = arith.constant 0 : index
    %c0_5 = arith.constant 0 : index
    %5 = vector.load %arg3[%c0_3, %c0_4, %c0_5] : memref<1x8x32xf32, #tpu.memory_space<vmem>>, vector<1x8x32xf32>
    %6 = vector.shape_cast %5 : vector<1x8x32xf32> to vector<8x32xf32>
    %c0_6 = arith.constant 0 : index
    %c0_7 = arith.constant 0 : index
    %c0_8 = arith.constant 0 : index
    %7 = vector.load %arg9[%c0_6, %c0_7, %c0_8] : memref<1x9x32xf32, #tpu.memory_space<vmem>>, vector<1x9x32xf32>
    %8 = vector.shape_cast %7 : vector<1x9x32xf32> to vector<9x32xf32>
    %9 = vector.extract_strided_slice %8 {offsets = [0, 0], sizes = [1, 32], strides = [1, 1]} : vector<9x32xf32> to vector<1x32xf32>
    %10 = vector.extract_strided_slice %8 {offsets = [1, 0], sizes = [1, 32], strides = [1, 1]} : vector<9x32xf32> to vector<1x32xf32>
    %11 = vector.extract_strided_slice %8 {offsets = [2, 0], sizes = [1, 32], strides = [1, 1]} : vector<9x32xf32> to vector<1x32xf32>
    %12 = vector.extract_strided_slice %8 {offsets = [3, 0], sizes = [1, 32], strides = [1, 1]} : vector<9x32xf32> to vector<1x32xf32>
    %13 = vector.extract_strided_slice %8 {offsets = [4, 0], sizes = [1, 32], strides = [1, 1]} : vector<9x32xf32> to vector<1x32xf32>
    %14 = vector.extract_strided_slice %8 {offsets = [5, 0], sizes = [1, 32], strides = [1, 1]} : vector<9x32xf32> to vector<1x32xf32>
    %15 = vector.extract_strided_slice %8 {offsets = [6, 0], sizes = [1, 32], strides = [1, 1]} : vector<9x32xf32> to vector<1x32xf32>
    %16 = vector.extract_strided_slice %8 {offsets = [7, 0], sizes = [1, 32], strides = [1, 1]} : vector<9x32xf32> to vector<1x32xf32>
    %17 = vector.extract_strided_slice %8 {offsets = [8, 0], sizes = [1, 32], strides = [1, 1]} : vector<9x32xf32> to vector<1x32xf32>
    %c0_9 = arith.constant 0 : index
    %c0_10 = arith.constant 0 : index
    %c0_11 = arith.constant 0 : index
    %18 = vector.load %arg10[%c0_9, %c0_10, %c0_11] : memref<1x1x64xf32, #tpu.memory_space<vmem>>, vector<1x1x64xf32>
    %19 = vector.shape_cast %18 : vector<1x1x64xf32> to vector<1x64xf32>
    %20 = arith.addf %4, %6 : vector<8x32xf32>
    %c0_12 = arith.constant 0 : index
    %c0_13 = arith.constant 0 : index
    %c0_14 = arith.constant 0 : index
    %21 = vector.load %arg4[%c0_12, %c0_13, %c0_14] : memref<1x32x64xf32, #tpu.memory_space<vmem>>, vector<1x32x64xf32>
    %22 = vector.shape_cast %21 : vector<1x32x64xf32> to vector<32x64xf32>
    %cst = arith.constant dense<0.000000e+00> : vector<8x64xf32>
    %23 = tpu.matmul %20, %22, %cst {dimension_numbers = #tpu.dot_dimension_numbers<[1], [0], [0], [1], [0, 0, 1, 1], [], []>} : vector<8x32xf32>, vector<32x64xf32>, vector<8x64xf32> -> vector<8x64xf32>
    %24 = vector.extract_strided_slice %23 {offsets = [0, 0], sizes = [8, 32], strides = [1, 1]} : vector<8x64xf32> to vector<8x32xf32>
    %25 = vector.broadcast %9 : vector<1x32xf32> to vector<8x32xf32>
    %26 = arith.addf %24, %25 : vector<8x32xf32>
    %27 = vector.extract_strided_slice %23 {offsets = [0, 32], sizes = [8, 32], strides = [1, 1]} : vector<8x64xf32> to vector<8x32xf32>
    %28 = vector.broadcast %10 : vector<1x32xf32> to vector<8x32xf32>
    %29 = arith.addf %27, %28 : vector<8x32xf32>
    %c0_15 = arith.constant 0 : index
    %c0_16 = arith.constant 0 : index
    %c0_17 = arith.constant 0 : index
    %30 = vector.load %arg5[%c0_15, %c0_16, %c0_17] : memref<1x32x32xf32, #tpu.memory_space<vmem>>, vector<1x32x32xf32>
    %31 = vector.shape_cast %30 : vector<1x32x32xf32> to vector<32x32xf32>
    %cst_18 = arith.constant dense<0.000000e+00> : vector<8x32xf32>
    %32 = tpu.matmul %4, %31, %cst_18 {dimension_numbers = #tpu.dot_dimension_numbers<[1], [0], [0], [1], [0, 0, 1, 1], [], []>} : vector<8x32xf32>, vector<32x32xf32>, vector<8x32xf32> -> vector<8x32xf32>
    %33 = vector.broadcast %11 : vector<1x32xf32> to vector<8x32xf32>
    %34 = arith.addf %32, %33 : vector<8x32xf32>
    %35 = vector.extract_strided_slice %29 {offsets = [0, 0], sizes = [8, 8], strides = [1, 1]} : vector<8x32xf32> to vector<8x8xf32>
    %36 = vector.extract_strided_slice %29 {offsets = [0, 8], sizes = [8, 8], strides = [1, 1]} : vector<8x32xf32> to vector<8x8xf32>
    %37 = vector.extract_strided_slice %29 {offsets = [0, 16], sizes = [8, 8], strides = [1, 1]} : vector<8x32xf32> to vector<8x8xf32>
    %38 = vector.extract_strided_slice %29 {offsets = [0, 24], sizes = [8, 8], strides = [1, 1]} : vector<8x32xf32> to vector<8x8xf32>
    %39 = vector.shape_cast %35 : vector<8x8xf32> to vector<1x8x8xf32>
    %40 = vector.shape_cast %36 : vector<8x8xf32> to vector<1x8x8xf32>
    %41 = vector.shape_cast %37 : vector<8x8xf32> to vector<1x8x8xf32>
    %42 = vector.shape_cast %38 : vector<8x8xf32> to vector<1x8x8xf32>
    %43 = tpu.concatenate %39, %40, %41, %42 in 0 : vector<1x8x8xf32>, vector<1x8x8xf32>, vector<1x8x8xf32>, vector<1x8x8xf32> -> vector<4x8x8xf32>
    %44 = vector.extract_strided_slice %34 {offsets = [0, 0], sizes = [8, 8], strides = [1, 1]} : vector<8x32xf32> to vector<8x8xf32>
    %45 = vector.extract_strided_slice %34 {offsets = [0, 8], sizes = [8, 8], strides = [1, 1]} : vector<8x32xf32> to vector<8x8xf32>
    %46 = vector.extract_strided_slice %34 {offsets = [0, 16], sizes = [8, 8], strides = [1, 1]} : vector<8x32xf32> to vector<8x8xf32>
    %47 = vector.extract_strided_slice %34 {offsets = [0, 24], sizes = [8, 8], strides = [1, 1]} : vector<8x32xf32> to vector<8x8xf32>
    %48 = vector.shape_cast %44 : vector<8x8xf32> to vector<1x8x8xf32>
    %49 = vector.shape_cast %45 : vector<8x8xf32> to vector<1x8x8xf32>
    %50 = vector.shape_cast %46 : vector<8x8xf32> to vector<1x8x8xf32>
    %51 = vector.shape_cast %47 : vector<8x8xf32> to vector<1x8x8xf32>
    %52 = tpu.concatenate %48, %49, %50, %51 in 0 : vector<1x8x8xf32>, vector<1x8x8xf32>, vector<1x8x8xf32>, vector<1x8x8xf32> -> vector<4x8x8xf32>
    %53 = vector.extract_strided_slice %26 {offsets = [0, 0], sizes = [8, 8], strides = [1, 1]} : vector<8x32xf32> to vector<8x8xf32>
    %54 = vector.extract_strided_slice %26 {offsets = [0, 8], sizes = [8, 8], strides = [1, 1]} : vector<8x32xf32> to vector<8x8xf32>
    %55 = vector.extract_strided_slice %26 {offsets = [0, 16], sizes = [8, 8], strides = [1, 1]} : vector<8x32xf32> to vector<8x8xf32>
    %56 = vector.extract_strided_slice %26 {offsets = [0, 24], sizes = [8, 8], strides = [1, 1]} : vector<8x32xf32> to vector<8x8xf32>
    %57 = vector.shape_cast %53 : vector<8x8xf32> to vector<1x8x8xf32>
    %58 = vector.shape_cast %54 : vector<8x8xf32> to vector<1x8x8xf32>
    %59 = vector.shape_cast %55 : vector<8x8xf32> to vector<1x8x8xf32>
    %60 = vector.shape_cast %56 : vector<8x8xf32> to vector<1x8x8xf32>
    %61 = tpu.concatenate %57, %58, %59, %60 in 0 : vector<1x8x8xf32>, vector<1x8x8xf32>, vector<1x8x8xf32>, vector<1x8x8xf32> -> vector<4x8x8xf32>
    "tpu.trace_start"() <{level = 10 : i32, message = "hqd,hkd->hqk"}> : () -> ()
    %cst_19 = arith.constant dense<0.000000e+00> : vector<4x8x8xf32>
    %62 = tpu.matmul %61, %43, %cst_19 {dimension_numbers = #tpu.dot_dimension_numbers<[2], [2], [1], [1], [0, 0, 0, 1, 1, 1], [0], [0]>} : vector<4x8x8xf32>, vector<4x8x8xf32>, vector<4x8x8xf32> -> vector<4x8x8xf32>
    "tpu.trace_stop"() : () -> ()
    %cst_20 = arith.constant 0.353553385 : f32
    %63 = vector.broadcast %cst_20 : f32 to vector<4x8x8xf32>
    %64 = arith.mulf %62, %63 : vector<4x8x8xf32>
    %cst_21 = arith.constant dense<0xFF800000> : vector<4x8xf32>
    %65 = vector.multi_reduction <maximumf>, %64, %cst_21 [2] : vector<4x8x8xf32> to vector<4x8xf32>
    %66 = vector.shape_cast %65 : vector<4x8xf32> to vector<4x8x1xf32>
    %67 = vector.broadcast %66 : vector<4x8x1xf32> to vector<4x8x8xf32>
    %68 = arith.subf %64, %67 : vector<4x8x8xf32>
    %69 = math.exp %68 : vector<4x8x8xf32>
    %cst_22 = arith.constant dense<0.000000e+00> : vector<4x8xf32>
    %70 = vector.multi_reduction <add>, %69, %cst_22 [2] : vector<4x8x8xf32> to vector<4x8xf32>
    %71 = vector.shape_cast %70 : vector<4x8xf32> to vector<4x8x1xf32>
    %72 = tpu.reciprocal %71 {approx = true} : vector<4x8x1xf32> -> vector<4x8x1xf32>
    %73 = vector.broadcast %72 : vector<4x8x1xf32> to vector<4x8x8xf32>
    %74 = arith.mulf %69, %73 : vector<4x8x8xf32>
    "tpu.trace_start"() <{level = 10 : i32, message = "hqk,hkd->hqd"}> : () -> ()
    %cst_23 = arith.constant dense<0.000000e+00> : vector<4x8x8xf32>
    %75 = tpu.matmul %74, %52, %cst_23 {dimension_numbers = #tpu.dot_dimension_numbers<[2], [1], [1], [2], [0, 0, 0, 1, 1, 2], [0], [0]>} : vector<4x8x8xf32>, vector<4x8x8xf32>, vector<4x8x8xf32> -> vector<4x8x8xf32>
    "tpu.trace_stop"() : () -> ()
    %76 = vector.extract_strided_slice %75 {offsets = [0, 0, 0], sizes = [1, 8, 8], strides = [1, 1, 1]} : vector<4x8x8xf32> to vector<1x8x8xf32>
    %77 = vector.shape_cast %76 : vector<1x8x8xf32> to vector<8x8xf32>
    %78 = vector.extract_strided_slice %75 {offsets = [1, 0, 0], sizes = [1, 8, 8], strides = [1, 1, 1]} : vector<4x8x8xf32> to vector<1x8x8xf32>
    %79 = vector.shape_cast %78 : vector<1x8x8xf32> to vector<8x8xf32>
    %80 = vector.extract_strided_slice %75 {offsets = [2, 0, 0], sizes = [1, 8, 8], strides = [1, 1, 1]} : vector<4x8x8xf32> to vector<1x8x8xf32>
    %81 = vector.shape_cast %80 : vector<1x8x8xf32> to vector<8x8xf32>
    %82 = vector.extract_strided_slice %75 {offsets = [3, 0, 0], sizes = [1, 8, 8], strides = [1, 1, 1]} : vector<4x8x8xf32> to vector<1x8x8xf32>
    %83 = vector.shape_cast %82 : vector<1x8x8xf32> to vector<8x8xf32>
    %84 = tpu.concatenate %77, %79, %81, %83 in 1 : vector<8x8xf32>, vector<8x8xf32>, vector<8x8xf32>, vector<8x8xf32> -> vector<8x32xf32>
    %c0_24 = arith.constant 0 : index
    %c0_25 = arith.constant 0 : index
    %85 = vector.load %arg12[%c0_24, %c0_25] : memref<8x32xf32, #tpu.memory_space<vmem>>, vector<8x32xf32>
    tpu.vector_store %arg12[%c0_24, %c0_25], %84 {strides = array<i32>} : memref<8x32xf32, #tpu.memory_space<vmem>>, vector<8x32xf32>,
    %c0_26 = arith.constant 0 : index
    %c0_27 = arith.constant 0 : index
    %86 = vector.load %arg12[%c0_26, %c0_27] : memref<8x32xf32, #tpu.memory_space<vmem>>, vector<8x32xf32>
    %c0_28 = arith.constant 0 : index
    %c0_29 = arith.constant 0 : index
    %c0_30 = arith.constant 0 : index
    %87 = vector.load %arg6[%c0_28, %c0_29, %c0_30] : memref<1x32x32xf32, #tpu.memory_space<vmem>>, vector<1x32x32xf32>
    %88 = vector.shape_cast %87 : vector<1x32x32xf32> to vector<32x32xf32>
    %cst_31 = arith.constant dense<0.000000e+00> : vector<8x32xf32>
    %89 = tpu.matmul %86, %88, %cst_31 {dimension_numbers = #tpu.dot_dimension_numbers<[1], [0], [0], [1], [0, 0, 1, 1], [], []>} : vector<8x32xf32>, vector<32x32xf32>, vector<8x32xf32> -> vector<8x32xf32>
    %90 = vector.broadcast %12 : vector<1x32xf32> to vector<8x32xf32>
    %91 = arith.addf %89, %90 : vector<8x32xf32>
    %92 = arith.addf %4, %91 : vector<8x32xf32>
    %cst_32 = arith.constant dense<0.000000e+00> : vector<8xf32>
    %93 = vector.multi_reduction <add>, %92, %cst_32 [1] : vector<8x32xf32> to vector<8xf32>
    %94 = vector.shape_cast %93 : vector<8xf32> to vector<8x1xf32>
    %cst_33 = arith.constant 3.200000e+01 : f32
    %95 = vector.broadcast %cst_33 : f32 to vector<8x1xf32>
    %96 = arith.divf %94, %95 : vector<8x1xf32>
    %97 = vector.broadcast %96 : vector<8x1xf32> to vector<8x32xf32>
    %98 = arith.subf %92, %97 : vector<8x32xf32>
    %99 = arith.mulf %98, %98 : vector<8x32xf32>
    %cst_34 = arith.constant dense<0.000000e+00> : vector<8xf32>
    %100 = vector.multi_reduction <add>, %99, %cst_34 [1] : vector<8x32xf32> to vector<8xf32>
    %101 = vector.shape_cast %100 : vector<8xf32> to vector<8x1xf32>
    %cst_35 = arith.constant 3.200000e+01 : f32
    %102 = vector.broadcast %cst_35 : f32 to vector<8x1xf32>
    %103 = arith.divf %101, %102 : vector<8x1xf32>
    %104 = vector.broadcast %96 : vector<8x1xf32> to vector<8x32xf32>
    %105 = arith.subf %92, %104 : vector<8x32xf32>
    %cst_36 = arith.constant 9.99999974E-6 : f32
    %106 = vector.broadcast %cst_36 : f32 to vector<8x1xf32>
    %107 = arith.addf %103, %106 : vector<8x1xf32>
    %108 = math.rsqrt %107 : vector<8x1xf32>
    %109 = vector.broadcast %108 : vector<8x1xf32> to vector<8x32xf32>
    %110 = arith.mulf %105, %109 : vector<8x32xf32>
    %111 = vector.broadcast %13 : vector<1x32xf32> to vector<8x32xf32>
    %112 = arith.mulf %110, %111 : vector<8x32xf32>
    %113 = vector.broadcast %14 : vector<1x32xf32> to vector<8x32xf32>
    %114 = arith.addf %112, %113 : vector<8x32xf32>
    %c0_37 = arith.constant 0 : index
    %c0_38 = arith.constant 0 : index
    %c0_39 = arith.constant 0 : index
    %115 = vector.load %arg7[%c0_37, %c0_38, %c0_39] : memref<1x32x64xf32, #tpu.memory_space<vmem>>, vector<1x32x64xf32>
    %116 = vector.shape_cast %115 : vector<1x32x64xf32> to vector<32x64xf32>
    %cst_40 = arith.constant dense<0.000000e+00> : vector<8x64xf32>
    %117 = tpu.matmul %114, %116, %cst_40 {dimension_numbers = #tpu.dot_dimension_numbers<[1], [0], [0], [1], [0, 0, 1, 1], [], []>} : vector<8x32xf32>, vector<32x64xf32>, vector<8x64xf32> -> vector<8x64xf32>
    %118 = vector.broadcast %19 : vector<1x64xf32> to vector<8x64xf32>
    %119 = arith.addf %117, %118 : vector<8x64xf32>
    %cst_41 = arith.constant 0.000000e+00 : f32
    %120 = vector.broadcast %cst_41 : f32 to vector<8x64xf32>
    %121 = arith.maximumf %119, %120 : vector<8x64xf32>
    %c0_42 = arith.constant 0 : index
    %c0_43 = arith.constant 0 : index
    %c0_44 = arith.constant 0 : index
    %122 = vector.load %arg8[%c0_42, %c0_43, %c0_44] : memref<1x64x32xf32, #tpu.memory_space<vmem>>, vector<1x64x32xf32>
    %123 = vector.shape_cast %122 : vector<1x64x32xf32> to vector<64x32xf32>
    %cst_45 = arith.constant dense<0.000000e+00> : vector<8x32xf32>
    %124 = tpu.matmul %121, %123, %cst_45 {dimension_numbers = #tpu.dot_dimension_numbers<[1], [0], [0], [1], [0, 0, 1, 1], [], []>} : vector<8x64xf32>, vector<64x32xf32>, vector<8x32xf32> -> vector<8x32xf32>
    %125 = vector.broadcast %15 : vector<1x32xf32> to vector<8x32xf32>
    %126 = arith.addf %124, %125 : vector<8x32xf32>
    %127 = arith.addf %114, %126 : vector<8x32xf32>
    %cst_46 = arith.constant dense<0.000000e+00> : vector<8xf32>
    %128 = vector.multi_reduction <add>, %127, %cst_46 [1] : vector<8x32xf32> to vector<8xf32>
    %129 = vector.shape_cast %128 : vector<8xf32> to vector<8x1xf32>
    %cst_47 = arith.constant 3.200000e+01 : f32
    %130 = vector.broadcast %cst_47 : f32 to vector<8x1xf32>
    %131 = arith.divf %129, %130 : vector<8x1xf32>
    %132 = vector.broadcast %131 : vector<8x1xf32> to vector<8x32xf32>
    %133 = arith.subf %127, %132 : vector<8x32xf32>
    %134 = arith.mulf %133, %133 : vector<8x32xf32>
    %cst_48 = arith.constant dense<0.000000e+00> : vector<8xf32>
    %135 = vector.multi_reduction <add>, %134, %cst_48 [1] : vector<8x32xf32> to vector<8xf32>
    %136 = vector.shape_cast %135 : vector<8xf32> to vector<8x1xf32>
    %cst_49 = arith.constant 3.200000e+01 : f32
    %137 = vector.broadcast %cst_49 : f32 to vector<8x1xf32>
    %138 = arith.divf %136, %137 : vector<8x1xf32>
    %139 = vector.broadcast %131 : vector<8x1xf32> to vector<8x32xf32>
    %140 = arith.subf %127, %139 : vector<8x32xf32>
    %cst_50 = arith.constant 9.99999974E-6 : f32
    %141 = vector.broadcast %cst_50 : f32 to vector<8x1xf32>
    %142 = arith.addf %138, %141 : vector<8x1xf32>
    %143 = math.rsqrt %142 : vector<8x1xf32>
    %144 = vector.broadcast %143 : vector<8x1xf32> to vector<8x32xf32>
    %145 = arith.mulf %140, %144 : vector<8x32xf32>
    %146 = vector.broadcast %16 : vector<1x32xf32> to vector<8x32xf32>
    %147 = arith.mulf %145, %146 : vector<8x32xf32>
    %148 = vector.broadcast %17 : vector<1x32xf32> to vector<8x32xf32>
    %149 = arith.addf %147, %148 : vector<8x32xf32>
    %c0_51 = arith.constant 0 : index
    %c0_52 = arith.constant 0 : index
    %c0_53 = arith.constant 0 : index
    %150 = vector.load %arg11[%c0_51, %c0_52, %c0_53] : memref<1x8x32xf32, #tpu.memory_space<vmem>>, vector<1x8x32xf32>
    %151 = vector.shape_cast %150 : vector<1x8x32xf32> to vector<8x32xf32>
    %152 = vector.shape_cast %149 : vector<8x32xf32> to vector<1x8x32xf32>
    tpu.vector_store %arg11[%c0_51, %c0_52, %c0_53], %152 {strides = array<i32>} : memref<1x8x32xf32, #tpu.memory_space<vmem>>, vector<1x8x32xf32>,
    return
  }
  func.func @transform_0(%arg0: i32, %arg1: i32) -> (i32, i32, i32) {
    %c0_i32 = arith.constant 0 : i32
    %c0_i32_0 = arith.constant 0 : i32
    %c0_i32_1 = arith.constant 0 : i32
    return %arg0, %c0_i32, %c0_i32_0 : i32, i32, i32
  }
  func.func @transform_1(%arg0: i32, %arg1: i32) -> (i32, i32, i32) {
    %c0_i32 = arith.constant 0 : i32
    %c0_i32_0 = arith.constant 0 : i32
    %c0_i32_1 = arith.constant 0 : i32
    return %arg0, %c0_i32, %c0_i32_0 : i32, i32, i32
  }
  func.func @transform_2(%arg0: i32, %arg1: i32) -> (i32, i32, i32) {
    %c0_i32 = arith.constant 0 : i32
    %c0_i32_0 = arith.constant 0 : i32
    %c0_i32_1 = arith.constant 0 : i32
    return %arg1, %c0_i32, %c0_i32_0 : i32, i32, i32
  }
  func.func @transform_3(%arg0: i32, %arg1: i32) -> (i32, i32, i32) {
    %c0_i32 = arith.constant 0 : i32
    %c0_i32_0 = arith.constant 0 : i32
    %c0_i32_1 = arith.constant 0 : i32
    return %arg1, %c0_i32, %c0_i32_0 : i32, i32, i32
  }
  func.func @transform_4(%arg0: i32, %arg1: i32) -> (i32, i32, i32) {
    %c0_i32 = arith.constant 0 : i32
    %c0_i32_0 = arith.constant 0 : i32
    %c0_i32_1 = arith.constant 0 : i32
    return %arg1, %c0_i32, %c0_i32_0 : i32, i32, i32
  }
  func.func @transform_5(%arg0: i32, %arg1: i32) -> (i32, i32, i32) {
    %c0_i32 = arith.constant 0 : i32
    %c0_i32_0 = arith.constant 0 : i32
    %c0_i32_1 = arith.constant 0 : i32
    return %arg1, %c0_i32, %c0_i32_0 : i32, i32, i32
  }
  func.func @transform_6(%arg0: i32, %arg1: i32) -> (i32, i32, i32) {
    %c0_i32 = arith.constant 0 : i32
    %c0_i32_0 = arith.constant 0 : i32
    %c0_i32_1 = arith.constant 0 : i32
    return %arg1, %c0_i32, %c0_i32_0 : i32, i32, i32
  }
  func.func @transform_7(%arg0: i32, %arg1: i32) -> (i32, i32, i32) {
    %c0_i32 = arith.constant 0 : i32
    %c0_i32_0 = arith.constant 0 : i32
    %c0_i32_1 = arith.constant 0 : i32
    return %arg1, %c0_i32, %c0_i32_0 : i32, i32, i32
  }
  func.func @transform_8(%arg0: i32, %arg1: i32) -> (i32, i32, i32) {
    %c0_i32 = arith.constant 0 : i32
    %c0_i32_0 = arith.constant 0 : i32
    %c0_i32_1 = arith.constant 0 : i32
    return %arg1, %c0_i32, %c0_i32_0 : i32, i32, i32
  }
  func.func @transform_9(%arg0: i32, %arg1: i32) -> (i32, i32, i32) {
    %c0_i32 = arith.constant 0 : i32
    %c0_i32_0 = arith.constant 0 : i32
    %c0_i32_1 = arith.constant 0 : i32
    return %arg0, %c0_i32, %c0_i32_0 : i32, i32, i32
  }
}

</mosaic_0001>

<bundles_post_ra>
// kernel: tpu_custom_call.1
= control target key start
LH: loop header
LB: loop body
LE: loop exit
PB: predicated region body
PF: predicated region fallthrough
CT: control target
= control target key end

     0   :  { %s3017_s0 = inlined_call_operand.hbm [shape: f32[2,8,32], index: 0, kind: input, shape index: {}, may-alias: {0,9}]   ;;  %s3018_s1 = inlined_call_operand.vmem [shape: f32[2,8,32], index: 1, kind: input, shape index: {}]   ;;  %s3019_s2 = inlined_call_operand.vmem [shape: f32[2,32,64], index: 2, kind: input, shape index: {}]   ;;  %s3020_s3 = inlined_call_operand.vmem [shape: f32[2,32,32], index: 3, kind: input, shape index: {}]   ;;  %s3021_s4 = inlined_call_operand.vmem [shape: f32[2,32,32], index: 4, kind: input, shape index: {}]   ;;  %s3022_s5 = inlined_call_operand.hbm [shape: f32[2,32,64], index: 5, kind: input, shape index: {}]   ;;  %s3023_s6 = inlined_call_operand.vmem [shape: f32[2,64,32], index: 6, kind: input, shape index: {}]   ;;  %s3024_s7 = inlined_call_operand.vmem [shape: f32[2,9,32], index: 7, kind: input, shape index: {}]   ;;  %s3025_s8 = inlined_call_operand.vmem [shape: f32[2,1,64], index: 8, kind: input, shape index: {}]   ;;  %s3026_s9 = inlined_call_operand.hbm [shape: f32[2,8,32], index: 9, kind: output, shape index: {}, may-alias: {0,9}]  }
   0x1   :  { %3044 = sst [smem:[#allocation25_spill]] %s3017_s0 }
   0x2   :  { %3045 = sst [smem:[#allocation26_spill]] %s3018_s1 }
   0x3   :  { %3046 = sst [smem:[#allocation27_spill]] %s3019_s2 }
   0x4   :  { %3047 = sst [smem:[#allocation28_spill]] %s3020_s3 }
   0x5   :  { %3048 = sst [smem:[#allocation29_spill]] %s3022_s5 }
   0x6   :  { %3049 = sst [smem:[#allocation30_spill]] %s3024_s7 }
   0x7   :  { %3050 = sst [smem:[#allocation31_spill]] %s3025_s8 }
   0x8   :  { %3051 = sst [smem:[#allocation32_spill]] %s3026_s9 }
   0x9   :  { %14 = vsyncpa [#allocation4], 0 }
   0xa   :  { %16 = vsyncpa [#allocation4 + $0x1], 0 }
   0xb   :  { %17 = vsyncpa [#allocation7], 0 }
   0xc   :  { %19 = vsyncpa [#allocation7 + $0x1], 0 }
   0xd   :  { %20 = vsyncpa [#allocation5], 0 }
   0xe   :  { %22 = vsyncpa [#allocation5 + $0x1], 0  ;;  %s2537_s30 = smov 0   ;;  %s2539_s10 = smov 0  }
   0xf   :  { %s2541_s11 = smov 0   ;;  %s2543_s12 = smov 0  }
  0x10   :  { %s2545_s13 = smov 0   ;;  %s2547_s14 = smov 0  }
  0x11   :  { %s2549_s15 = smov 0   ;;  %s2551_s16 = smov 0  }
  0x12   :  { %s2553_s17 = smov 0   ;;  %s2555_s18 = smov 0  }
  0x13   :  { %s2557_s19 = smov 0  }
  0x14 LB: > { %3052 = sst [smem:[#allocation12_spill]] %s2437_s11  ;;  %s1905_s20 = sadd.s32 4294967295, %s2469_s19   ;;  %s2469_s19 = sphi %s2557_s19, %s28_s19   ;;  %s2465_s18 = sphi %s2555_s18, %s3105_s18   ;;  %s2461_s17 = sphi %s2553_s17, %s3101_s17   ;;  %s2457_s16 = sphi %s2551_s16, %s3100_s16   ;;  %s2453_s15 = sphi %s2549_s15, %s3099_s15   ;;  %s2449_s14 = sphi %s2547_s14, %s3098_s14   ;;  %s2445_s13 = sphi %s2545_s13, %s3097_s13   ;;  %s2441_s12 = sphi %s2543_s12, %s3096_s12   ;;  %s2437_s11 = sphi %s2541_s11, %s3095_s11   ;;  %s2433_s10 = sphi %s2539_s10, %s3104_s10   ;;  %s2429_s30 = sphi %s2537_s30, %s3103_s30  }
  0x15   : > { %3053 = sst [smem:[#allocation13_spill]] %s2441_s12  ;;  %s1906_s21 = sadd.s32 4294967294, %s2469_s19  }
  0x16   : > { %3054 = sst [smem:[#allocation14_spill]] %s2445_s13  ;;  %p54_p0 = scmp.ne.s32.totalorder %s2449_s14, %s2445_s13 }
  0x17   : > { %3055 = sst [smem:[#allocation15_spill]] %s2449_s14  ;;  %p55_p1 = scmp.eq.s32.totalorder %s2469_s19, 0 }
  0x18   : > { %3056 = sst [smem:[#allocation16_spill]] %s2461_s17  ;;  %p60_p2 = scmp.ne.s32.totalorder %s2445_s13, %s2441_s12 }
  0x19   : > { %3057 = sst [smem:[#allocation17_spill]] %s2465_s18  ;;  %p61_p3 = scmp.eq.s32.totalorder %s1905_s20, 0 }
  0x1a   : > { %3058 = sst [smem:[#allocation18_spill]] %s2469_s19  ;;  %p2599_p4 = por %p55_p1, %p54_p0 }
  0x1b   : > { %p184_p5 = scmp.ne.s32.totalorder %s2437_s11, %s2433_s10  ;;  %p2605_p6 = por %p61_p3, %p60_p2 }
  0x1c   : > { %p190_p7 = scmp.ne.s32.totalorder %s2433_s10, %s2429_s30  ;;  %p292_p9 = scmp.eq.s32.totalorder %s1905_s20, 3 }
  0x1d   : > { %s3060_s25 = scalar_select %p2605_p6, 1, 0 }
  0x1e   : > { %p2610_p8 = por %p184_p5, %p55_p1  ;;  %p2614_p10 = por %p190_p7, %p61_p3 }
  0x1f   : > { %p298_p11 = scmp.eq.s32.totalorder %s1906_s21, 3  ;;  %p2618_p12 = por %p292_p9, %p54_p0 }
  0x20   : > { %s3062_s27 = scalar_select %p2614_p10, 1, 0 }
  0x21   : > { %s3063_s28 = scalar_select %p2618_p12, 1, 0 }
  0x22   : > { %p2622_p13 = por %p298_p11, %p60_p2  ;;  %p2160_p1 = scmp.lt.s32.totalorder %s2469_s19, 4 }
  0x23   : > { %3064 = sst [smem:[#allocation19_spill]] %s3063_s28  ;;  %s318_s30 = sand.u32 1, %s2449_s14  }
  0x24   : > { %s3065_s29 = scalar_select %p2622_p13, 1, 0 }
  0x25   : > { %s1910_s23 = sshll.u32 %s2465_s18, 7  ;;  %s1909_s22 = sshll.u32 %s318_s30, 3 }
  0x26   : > { %3066 = sst [smem:[#allocation20_spill]] %s3065_s29  ;;  %s3067_s0 = sld [smem:[#allocation25_spill]] }
  0x27   : > { %s322_s21 = scalar_lea.vmem [#allocation3], %s1909_s22  ;;  %p2636_p0 = pnand %p2160_p1, %p2599_p4 }
  0x28   : > { %s329_s8 = sshll.u32 %s322_s21, 4  ;;  %p2644_p2 = pnand %p2160_p1, %p2610_p8  ;;  %s2640_s8 = int_to_ptr.vmem [resolvable:$true] %s329_s8 }
  0x29   : > { %s319_s12 = scalar_lea.sflag [#allocation4], %s318_s30  ;;  %p2285_p7 = pneg %p2636_p0 }
  0x2c   : > { %s2632_s20 = scalar_lea.hbm %s3067_s0, %s1910_s23  ;;  %s2288_s21 = scalar_lea.hbm %s3067_s0, 256 }
  0x2d   : > { %s2283_s23 = scalar_lea.hbm %s2632_s20, 128  ;;  %p2289_p8 = scmp.lt.u32.totalorder %s2632_s20, %s3067_s0 }
  0x2e   : > { %p2284_p5 = scmp.ne.s32.totalorder %s2632_s20, %s2283_s23  ;;  %p2290_p11 = scmp.lt.u32.totalorder %s2288_s21, %s2283_s23 }
  0x2f   : > { %p2292_p3 = scmp.lt.u32.totalorder %s2283_s23, %s2632_s20 }
  0x30   : > { %p2286_p4 = pnand %p2285_p7, %p2284_p5  ;;  %p2291_p1 = por %p2290_p11, %p2289_p8 }
  0x32   : > { %p2287_p9 = pneg %p2286_p4  ;;  %p2293_p13 = por %p2292_p3, %p2291_p1 }
  0x34   : > { %p2294_p12 = pnand %p2293_p13, %p2287_p9 }
  0x36   : > { %2297 = shalt.err (!%p2294_p12)
}
  0x37   : > { %s2298_s30 = scalar_lea.vmem %s2640_s8, 128  ;;  %s2471_s22 = smov [#allocation3]  }
  0x38   : > { %p2299_p5 = scmp.ne.s32.totalorder %s2640_s8, %s2298_s30  ;;  %s2303_s24 = sshll.u32 %s2471_s22, 4  ;;  %s2304_s24 = int_to_ptr.vmem [resolvable:$false] %s2303_s24 }
  0x39   : > { %s2305_s29 = scalar_lea.vmem %s2304_s24, 256  ;;  %p2306_p6 = scmp.lt.s32.totalorder %s2640_s8, %s2304_s24 }
  0x3a   : > { %p2301_p4 = pnand %p2299_p5, %p2285_p7  ;;  %p2307_p8 = scmp.lt.s32.totalorder %s2305_s29, %s2298_s30 }
  0x3c   : > { %p2302_p10 = pneg %p2301_p4  ;;  %p2308_p11 = por %p2307_p8, %p2306_p6 }
  0x3e   : > { %p2309_p3 = pnand %p2308_p11, %p2302_p10 }
  0x40   : > { %2312 = shalt.err (!%p2309_p3)
}
  0x41   : > { %2152 = dma.hbm_to_vmem [thread:$0]  (!%p2636_p0), %s2632_s20, 128, %s2640_s8, %s319_s12  }
  0x42   : > { %p408_p12 = scmp.lt.s32.totalorder %s2469_s19, 5  ;;  %s177_s23 = sadd.s32 1, %s2437_s11 }
  0x43   : > { %p3070_p13 = scmp.ge.s32.totalorder %s2469_s19, 1  ;;  %s37_s28 = sadd.s32 1, %s2461_s17 }
  0x44   : > { %s367_s26 = sand.u32 1, %s2437_s11   ;;  %p38_p10 = scmp.ge.s32.totalorder %s37_s28, 2 }
  0x45   : > { %p2678_p6 = pnand %p3070_p13, %p408_p12  ;;  %s1911_s30 = sshll.u32 %s367_s26, 5 }
  0x46   : > { %s1953_s22 = sshll.u32 %s2461_s17, 9  ;;  %s3107_s28 = smov (%p38_p10, %s37_s28), 0 }
  0x47   : > { %3072 = sst [smem:[#allocation21_spill]] %s3107_s28  ;;  %s3073_s24 = sadd.s32 1, %s2465_s18 }
  0x48   : > { %s3109_s24 = smov (!%p38_p10, %s3073_s24), %s2465_s18  ;;  %s174_s8 = ssub.s32 %s2461_s17, %s3107_s28 }
  0x49   : > { %p42_p0 = scmp.ge.s32.totalorder %s3109_s24, 2  ;;  %p175_p7 = scmp.eq.s32.totalorder %s174_s8, 0 }
  0x4a   : > { %s3074_s5 = sld [smem:[#allocation29_spill]]  ;;  %s371_s0 = scalar_lea.vmem [#allocation6], %s1911_s30 }
  0x4b   : > { %s378_s19 = sshll.u32 %s371_s0, 4  ;;  %s3111_s24 = smov (%p42_p0, %s3109_s24), 0  ;;  %s2704_s19 = int_to_ptr.vmem [resolvable:$true] %s378_s19 }
  0x4c   : > { %3075 = sst [smem:[#allocation22_spill]] %s3111_s24  ;;  %s44_s28 = ssub.s32 %s2465_s18, %s3111_s24 }
  0x4d   : > { %s2700_s7 = scalar_select %p175_p7, %s2437_s11, %s177_s23  }
  0x4e   : > { %p45_p9 = scmp.eq.s32.totalorder %s44_s28, 0  ;;  %s3077_s8 = sadd.s32 1, %s2449_s14 }
  0x4f   : > { %3076 = sst [smem:[#allocation23_spill]] %s2700_s7  ;;  %p2315_p5 = pneg %p2644_p2 }
  0x50   : > { %s2695_s29 = scalar_lea.hbm %s3074_s5, %s1953_s22  ;;  %s2711_s22 = scalar_lea.sflag [#allocation7], %s367_s26 }
  0x51   : > { %s2709_s17 = scalar_select %p45_p9, %s2449_s14, %s3077_s8  }
  0x52   : > { %s2313_s20 = scalar_lea.hbm %s2695_s29, 512  ;;  %s2318_s30 = scalar_lea.hbm %s3074_s5, 1024 }
  0x53   : > { %3078 = sst [smem:[#allocation24_spill]] %s2709_s17  ;;  %p2314_p1 = scmp.ne.s32.totalorder %s2695_s29, %s2313_s20 }
  0x54   : > { %p2319_p11 = scmp.lt.u32.totalorder %s2695_s29, %s3074_s5  ;;  %p2320_p3 = scmp.lt.u32.totalorder %s2318_s30, %s2313_s20 }
  0x55   : > { %p2316_p4 = pnand %p2315_p5, %p2314_p1  ;;  %p2322_p13 = scmp.lt.u32.totalorder %s2313_s20, %s2695_s29 }
  0x56   : > { %p2321_p12 = por %p2320_p3, %p2319_p11 }
  0x57   : > { %p2317_p8 = pneg %p2316_p4 }
  0x58   : > { %p2323_p10 = por %p2322_p13, %p2321_p12 }
  0x5a   : > { %p2324_p0 = pnand %p2323_p10, %p2317_p8 }
  0x5c   : > { %2327 = shalt.err (!%p2324_p0)
}
  0x5d   : > { %s2328_s28 = scalar_lea.vmem %s2704_s19, 512  ;;  %s2472_s26 = smov [#allocation6]  }
  0x5e   : > { %p2329_p7 = scmp.ne.s32.totalorder %s2704_s19, %s2328_s28  ;;  %s2333_s8 = sshll.u32 %s2472_s26, 4  ;;  %s2334_s8 = int_to_ptr.vmem [resolvable:$false] %s2333_s8 }
  0x5f   : > { %s2335_s24 = scalar_lea.vmem %s2334_s8, 1024  ;;  %p2336_p4 = scmp.lt.s32.totalorder %s2704_s19, %s2334_s8 }
  0x60   : > { %p2331_p9 = pnand %p2329_p7, %p2315_p5  ;;  %p2337_p11 = scmp.lt.s32.totalorder %s2335_s24, %s2328_s28 }
  0x62   : > { %p2332_p1 = pneg %p2331_p9  ;;  %p2338_p3 = por %p2337_p11, %p2336_p4 }
  0x64   : > { %p2339_p12 = pnand %p2338_p3, %p2332_p1 }
  0x66   : > { %2342 = shalt.err (!%p2339_p12)
}
  0x67   : > { %s2473_s20 = smov 128   ;;  %s2474_s0 = smov 8  }
  0x68   : > { %2155 = dma.hbm_to_vmem [thread:$0]  (!%p2644_p2), %s2695_s29, 512, %s2704_s19, %s2711_s22, %s2473_s20, %s2473_s20, %s2474_s0  }
  0x69   : > { %412 = sbr.rel (%p2678_p6) target bundleno = 2797 (0xaed), region = 56  ;;  %s2742_s23 = sand.u32 (!%p2678_p6), 1, %s2445_s13  }
  0x6a   : > { %s1915_s30 = sshll.u32 (!%p2678_p6), %s2742_s23, 3  ;;  %s415_s12 = scalar_lea.sflag (!%p2678_p6), [#allocation4], %s2742_s23 }
  0x6b   : > { %s418_s28 = scalar_lea.vmem (!%p2678_p6), [#allocation3], %s1915_s30  ;;  %p3079_p5 = scmp.ne.s32.totalorder (!%p2678_p6), %s3060_s25, 0 }
  0x70   : > { %2416 = dma.done.wait (%p3079_p5), %s415_s12, 128  }
  0x71   : > { %2418 = vsyncadd (%p3079_p5), %s415_s12, 4294967168  ;;  %s423_s19 = sand.u32 1, %s2433_s10   ;;  %p3080_p2 = scmp.ne.s32.totalorder %s3062_s27, 0 }
  0x72   : > { %s1916_s9 = sshll.u32 %s423_s19, 5  ;;  %s424_s21 = scalar_lea.sflag [#allocation7], %s423_s19 }
  0x73   : > { %s2751_s29 = scalar_lea.vmem [#allocation6], %s1916_s9 }
  0x74   : > { %2420 = dma.done.wait (%p3080_p2), %s424_s21, 512  }
  0x75   : > { %2422 = vsyncadd (%p3080_p2), %s424_s21, 4294966784  ;;  %p499_p6 = scmp.lt.s32.totalorder %s2457_s16, 1  ;;  %p503_p8 = scmp.lt.s32.totalorder %s2453_s15, 1 }
  0x76   : > { %s3081_s1 = sld [smem:[#allocation26_spill]]  ;;  %s3082_s2 = sld [smem:[#allocation27_spill]] }
  0x77   : > { %s500_s25 = scalar_select %p499_p6, %s2457_s16, 1 }
  0x78   : > { %s2761_s22 = scalar_select %p503_p8, %s2453_s15, 1 }
  0x79   : > { %s1918_s26 = sshll.u32 %s500_s25, 3  ;;  %s3083_s3 = sld [smem:[#allocation28_spill]] }
  0x7a   : > { %s1954_s27 = sshll.u32 %s2761_s22, 5  ;;  %s1957_s25 = sshll.u32 %s2761_s22, 6 }
  0x7b   : > { %s2780_s14 = scalar_lea.vmem %s3021_s4, %s1954_s27  ;;  %s1958_s24 = sshll.u32 %s2761_s22, 4 }
  0x7c   : > { %s2766_s20 = scalar_lea.vmem %s3081_s1, %s1918_s26  ;;  %s507_s19 = scalar_lea.vmem %s3082_s2, %s1954_s27 }
  0x7d   : > { %s2786_s26 = scalar_lea.vmem %s3023_s6, %s1957_s25  ;;  %s3084_s12 = sld [smem:[#allocation30_spill]] }
  0x7e   : > { %s2798_s11 = scalar_lea.vmem [#allocation8], %s1915_s30  ;;  %p1929_p13 = scmp.ne.s32.totalorder %s2453_s15, 0 }
  0x7f   : > { %s2775_s5 = scalar_lea.vmem %s3083_s3, %s1954_s27  ;;  %s3085_s3 = sld [smem:[#allocation31_spill]]  ;;  %v535_v0 = vld [vmem:[%s418_s28] sm:$0xff] (!%p1929_p13)  ;;  %vm536_vm0 = vcmask (!%p1929_p13), 261120  }
  0x80   : > { %534 = sbr.rel (%p1929_p13) target bundleno = 135 (0x87), region = 68  ;;  %537 = vst.msk [vmem:[%s2798_s11] sm:$0xff] (!%p1929_p13), %vm536_vm0, %v535_v0 }
  0x83   : > { %s2792_s2 = scalar_lea.vmem %s3084_s12, %s1958_s24 }
  0x85   : > { %s530_s7 = scalar_lea.vmem %s3085_s3, %s2761_s22 }
  0x87 PF: > { %v544_v1 = vld [vmem:[%s507_s19] sm:$0xff]  ;;  %v545_v2 = vld [vmem:[%s507_s19 + $0x8] sm:$0xff]  ;;  %v546_v3 = vld [vmem:[%s507_s19 + $0x10] sm:$0xff]  ;;  %v622_v4 = vlaneseq  ;;  %v2475_v5 = vmov 0.0|0.0   ;;  %vm2476_vm1 = vmmov 0   ;;  %v2477_v8 = vmov 0.0  }
  0x88   : > { %2107 = vmatprep.subr.bf16.mxu1 %v2475_v5  ;;  %v2108_v6 = vpack.c.bf16 %v545_v2, %v544_v1  ;;  %v547_v7 = vld [vmem:[%s507_s19 + $0x18] sm:$0xff]  ;;  %2012 = vmatprep.mubr.msk.f32.mxu1 %vm2476_vm1, %v2477_v8  ;;  %v539_v12 = vld [vmem:[%s2766_s20] sm:$0xff]  ;;  %vm548_vm2 = vcmask 261120   ;;  %s2478_s1 = smov 32   ;;  %v637_v19 = vld [vmem:[%s2775_s5 + $0x8] sm:$0xff]  ;;  %s2479_s3 = smov 112  }
  0x89   : > { %v2805_v9 = vshrl.u32 %v622_v4, 7  ;;  %2026 = vmatprep.subr.mxu0 %v2477_v8  ;;  %2028 = vmatprep.mubr.msk.f32.mxu0 %vm2476_vm1, %v2477_v8  ;;  %v2111_v10 = vpack.c.bf16 %v547_v7, %v546_v3  ;;  %v2811_v11 = vld [vmem:[%s2798_s11] sm:$0xff]  ;;  %v2815_v13 = vld [vmem:[%s2792_s2] sm:$0xff]  ;;  %s2480_s13 = smov 120   ;;  %s2481_s15 = smov 104   ;;  %vm743_vm3 = vcmask 64512  }
  0x8a   : > { %2109 = vmatpush3.bf16.msra.mxu1 %v2108_v6  ;;  %v543_v15 = vadd.f32 %v539_v12, %v2811_v11  ;;  %v636_v18 = vld [vmem:[%s2775_s5] sm:$0xff]  ;;  %v638_v20 = vld [vmem:[%s2775_s5 + $0x10] sm:$0xff]  ;;  %v639_v23 = vld [vmem:[%s2775_s5 + $0x18] sm:$0xff]  ;;  %s2482_s5 = smov 96   ;;  %s2483_s17 = smov 8   ;;  %vm1399_vm4 = vcmask 130048  }
  0x8b   : > { %2110 = vmatprep.subr.bf16.mxu1 %v2475_v5  ;;  %v629_v14 = vsub.s32 1, %v2805_v9  ;;  %v2114_v22 = vpack.c.bf16 %v637_v19, %v636_v18  ;;  %v624_v24 = vsub.s32 0, %v2805_v9  ;;  %v2117_v27 = vpack.c.bf16 %v639_v23, %v638_v20  ;;  %s2484_s18 = smov 16   ;;  %s2485_s30 = smov 24  }
  0x8c   : > { %v642_v36 = vsub.s32 2, %v2805_v9  ;;  %vm1401_vm5 = vcmask 195584   ;;  %vm1607_vm6 = vcmask 523264   ;;  %s1950_s22 = sshll.u32 %s2457_s16, 7  ;;  %s1720_s20 = sshll.u32 %s2798_s11, 4  ;;  %s2954_s20 = int_to_ptr.vmem [resolvable:$true] %s1720_s20 }
  0x8d   : > { %v630_v16 = vrot.slane %v2815_v13, %v629_v14  ;;  %v625_v28 = vrot.slane %v2815_v13, %v624_v24  ;;  %s3088_s25 = sld [smem:[#allocation32_spill]]  ;;  %s2343_s24 = scalar_lea.vmem %s2954_s20, 128 }
  0x8e   : > { %2112 = vmatpush3.bf16.msra.mxu1 %v2111_v10  ;;  %v643_v39 = vrot.slane %v2815_v13, %v642_v36  ;;  %p2344_p10 = scmp.ne.s32.totalorder %s2954_s20, %s2343_s24 }
  0x8f   : > { %632 = vrot.lane.b32.xlu0 %v630_v16, %s2478_s1  ;;  %2113 = vmatprep.subr.bf16.mxu1 %v2475_v5 }
  0x91   : > { %2013 = vmatmul.mubr.msk.f32.vlgmr.msra.gmra.mrb[0].mxu1 %vm548_vm2, %v543_v15 }
  0x92   : > { %2023 = vmatprep.mubr.msk.f32.mxu1 %vm2476_vm1, %v2477_v8  ;;  %2115 = vmatpush3.bf16.msra.mxu1 %v2114_v22 }
  0x93   : > { %2116 = vmatprep.subr.bf16.mxu1 %v2475_v5  ;;  %s2952_s8 = scalar_lea.hbm %s3088_s25, %s1950_s22 }
  0x96   : > { %2118 = vmatpush3.bf16.msra.mxu1 %v2117_v27 }
  0x97   : > { %2031 = vmatprep.subr.mxu1 %v2477_v8 }
  0x99   : > { %2024 = vmatmul.mubr.msk.f32.vlgmr.msra.gmra.mrb[2].mxu1 %vm548_vm2, %v2811_v11 }
  0x9a   : > { %2033 = vmatprep.mubr.msk.f32.mxu1 %vm2476_vm1, %v2477_v8 }
 0x101   : > { %v633_v17 = vpop.permute.xlu0 %632 }
 0x164   : > { %v618_v21 = vpop.f32.mrb[0].mxu1 }
 0x165   : > { %v635_v25 = vadd.f32 %v633_v17, %v618_v21  ;;  %v2014_v26 = vpop.f32.mrb[1].mxu1  ;;  %v626_v29 = vadd.f32 %v625_v28, %v618_v21 }
 0x167   : > { %720 = vrot.lane.b32.xlu1 %v635_v25, %s2479_s3  ;;  %718 = vrot.lane.b32.xlu0 %v635_v25, %s2480_s13 }
 0x16b   : > { %722 = vrot.lane.b32.xlu1 %v635_v25, %s2481_s15  ;;  %741 = vrot.lane.b32.xlu0 %v635_v25, %s2482_s5 }
 0x16c   : > { %v713_v34 = vpop.f32.mrb[2].mxu1 }
 0x16d   : > { %v2025_v35 = vpop.f32.mrb[3].mxu1  ;;  %v2857_v42 = vadd.f32 %v713_v34, %v643_v39 }
 0x16f   : > { %735 = vrot.lane.b32.xlu0 %v626_v29, %s2480_s13 }
 0x1d9   : > { %v721_v30 = vpop.permute.xlu1 %720  ;;  %v719_v31 = vpop.permute.xlu0 %718 }
 0x1da   : > { %818 = vrot.lane.b32.xlu1 %v719_v31, %s2482_s5 }
 0x1dd   : > { %v723_v32 = vpop.permute.xlu1 %722  ;;  %v742_v33 = vpop.permute.xlu0 %741 }
 0x1de   : > { %894 = vrot.lane.b32.xlu1 %v721_v30, %s2482_s5  ;;  %2027 = vmatpush3.xpose.msk.msra.mxu0 %vm743_vm3, %v742_v33 }
 0x1df   : > { %970 = vrot.lane.b32.xlu0 %v723_v32, %s2482_s5  ;;  %2036 = vmatprep.subr.mxu0 %v2477_v8 }
 0x1e1   : > { %2029 = vmatmul.mubr.msk.f32.vlgmr.msra.gmra.mrb[0].mxu0 %vm743_vm3, %v626_v29  ;;  %v736_v38 = vpop.permute.xlu0 %735 }
 0x1e2   : > { %737 = vrot.lane.b32.xlu1 %v626_v29, %s2479_s3  ;;  %2038 = vmatprep.mubr.msk.f32.mxu0 %vm2476_vm1, %v2477_v8 }
 0x1e3   : > { %739 = vrot.lane.b32.xlu0 %v626_v29, %s2481_s15 }
 0x24c   : > { %v819_v37 = vpop.permute.xlu1 %818 }
 0x24d   : > { %2032 = vmatpush3.xpose.msk.msra.mxu1 %vm743_vm3, %v819_v37 }
 0x24e   : > { %2041 = vmatprep.subr.mxu1 %v2477_v8 }
 0x250   : > { %v895_v40 = vpop.permute.xlu1 %894  ;;  %2034 = vmatmul.mubr.msk.f32.vlgmr.msra.gmra.mrb[4].mxu1 %vm743_vm3, %v736_v38 }
 0x251   : > { %v971_v41 = vpop.permute.xlu0 %970  ;;  %2037 = vmatpush3.xpose.msk.msra.mxu0 %vm743_vm3, %v895_v40  ;;  %2043 = vmatprep.mubr.msk.f32.mxu1 %vm2476_vm1, %v2477_v8 }
 0x252   : > { %2042 = vmatpush3.xpose.msk.msra.mxu1 %vm743_vm3, %v971_v41  ;;  %2046 = vmatprep.subr.mxu0 %v2477_v8 }
 0x253   : > { %2051 = vmatprep.subr.mxu1 %v2477_v8 }
 0x254   : > { %v738_v43 = vpop.permute.xlu1 %737 }
 0x255   : > { %v740_v44 = vpop.permute.xlu0 %739  ;;  %2039 = vmatmul.mubr.msk.f32.vlgmr.msra.gmra.mrb[2].mxu0 %vm743_vm3, %v738_v43  ;;  %v1405_v43 = vld [vmem:[%s2780_s14] sm:$0xff] }
 0x256   : > { %2044 = vmatmul.mubr.msk.f32.vlgmr.msra.gmra.mrb[6].mxu1 %vm743_vm3, %v740_v44  ;;  %2047 = vmatpush3.msra.mxu0 %v2857_v42  ;;  %v1406_v44 = vld [vmem:[%s2780_s14 + $0x8] sm:$0xff] }
 0x257   : > { %2048 = vmatprep.mubr.msk.f32.mxu0 %vm2476_vm1, %v2477_v8  ;;  %2056 = vmatprep.subr.mxu0 %v2477_v8 }
 0x258   : > { %2053 = vmatprep.mubr.msk.f32.mxu1 %vm2476_vm1, %v2477_v8 }
 0x2b4   : > { %v814_v45 = vpop.f32.mrb[0].mxu0 }
 0x2b5   : > { %v1046_v46 = vmul.f32 0.35355338, %v814_v45  ;;  %v2030_v47 = vpop.f32.mrb[1].mxu0  ;;  %v2120_v45 = vpack.c.bf16 %v1406_v44, %v1405_v43 }
 0x2b6   : > { %v1408_v47 = vld [vmem:[%s2780_s14 + $0x18] sm:$0xff] }
 0x2b7   : > { %v1050_v48 = vsel %vm743_vm3, %v1046_v46, -inf }
 0x2b8   : > { %1051 = vmax.xlane.f32.xlu1 %v1050_v48 }
 0x323   : > { %v890_v49 = vpop.f32.mrb[4].mxu1 }
 0x324   : > { %v1047_v50 = vmul.f32 0.35355338, %v890_v49  ;;  %v2035_v51 = vpop.f32.mrb[5].mxu1 }
 0x326   : > { %v1053_v52 = vsel %vm743_vm3, %v1047_v50, -inf }
 0x327   : > { %1054 = vmax.xlane.f32.xlu0 %v1053_v52 }
 0x328   : > { %v966_v53 = vpop.f32.mrb[2].mxu0 }
 0x329   : > { %v1048_v54 = vmul.f32 0.35355338, %v966_v53  ;;  %v1042_v55 = vpop.f32.mrb[6].mxu1  ;;  %v2040_v56 = vpop.f32.mrb[3].mxu0 }
 0x32a   : > { %v1049_v57 = vmul.f32 0.35355338, %v1042_v55  ;;  %v2045_v58 = vpop.f32.mrb[7].mxu1 }
 0x32b   : > { %v1056_v59 = vsel %vm743_vm3, %v1048_v54, -inf  ;;  %v1411_v58 = vsub.s32 3, %v2805_v9 }
 0x32c   : > { %1057 = vmax.xlane.f32.xlu0 %v1056_v59  ;;  %v1059_v60 = vsel %vm743_vm3, %v1049_v57, -inf }
 0x32d   : > { %1060 = vmax.xlane.f32.xlu1 %v1059_v60  ;;  %v1412_v59 = vrot.slane %v2815_v13, %v1411_v58 }
 0x345   : > { %v1052_v61 = vpop.xlane.xlu1 %1051 }
 0x346   : > { %v1062_v62 = vsub.f32 %v1046_v46, %v1052_v61  ;;  %v1407_v46 = vld [vmem:[%s2780_s14 + $0x10] sm:$0xff] }
 0x347   : > { %v2123_v48 = vpack.c.bf16 %v1408_v47, %v1407_v46 }
 0x348   : > { %v1066_v63 = vmul.f32 1.442695, %v1062_v62 }
 0x34a   : > { %2263 = vpow2.f32 %v1066_v63 }
 0x354   : > { %v2264_v0 = vpop.eup %2263 }
 0x355   : > { %v1074_v1 = vsel %vm743_vm3, %v2264_v0, 0.0 }
 0x356   : > { %1075 = vadd.xlane.f32.xlu0 %v1074_v1 }
 0x3b4   : > { %v1055_v2 = vpop.xlane.xlu0 %1054 }
 0x3b5   : > { %v1063_v3 = vsub.f32 %v1047_v50, %v1055_v2 }
 0x3b7   : > { %v1068_v4 = vmul.f32 1.442695, %v1063_v3 }
 0x3b9   : > { %2265 = vpow2.f32 %v1068_v4  ;;  %v1058_v6 = vpop.xlane.xlu0 %1057 }
 0x3ba   : > { %v1064_v7 = vsub.f32 %v1048_v54, %v1058_v6  ;;  %v1061_v17 = vpop.xlane.xlu1 %1060  ;;  %v1511_v6 = vld [vmem:[%s2751_s29] sm:$0xff] }
 0x3bb   : > { %v1065_v19 = vsub.f32 %v1049_v57, %v1061_v17  ;;  %v1597_v17 = vld [vmem:[%s2786_s26 + $0x10] sm:$0xff] }
 0x3bc   : > { %v1070_v10 = vmul.f32 1.442695, %v1064_v7  ;;  %v1512_v7 = vld [vmem:[%s2751_s29 + $0x8] sm:$0xff] }
 0x3bd   : > { %v1072_v20 = vmul.f32 1.442695, %v1065_v19  ;;  %v1598_v19 = vld [vmem:[%s2786_s26 + $0x18] sm:$0xff] }
 0x3be   : > { %2267 = vpow2.f32 %v1070_v10  ;;  %v2126_v10 = vpack.c.bf16 %v1512_v7, %v1511_v6 }
 0x3c3   : > { %v2266_v12 = vpop.eup %2265 }
 0x3c4   : > { %v1077_v14 = vsel %vm743_vm3, %v2266_v12, 0.0 }
 0x3c5   : > { %1078 = vadd.xlane.f32.xlu1 %v1077_v14 }
 0x3c8   : > { %v2268_v15 = vpop.eup %2267 }
 0x3c9   : > { %v1080_v16 = vsel %vm743_vm3, %v2268_v15, 0.0 }
 0x3ca   : > { %1081 = vadd.xlane.f32.xlu0 %v1080_v16  ;;  %v1596_v16 = vld [vmem:[%s2786_s26 + $0x8] sm:$0xff] }
 0x3d6   : > { %728 = vrot.lane.b32.xlu1 %v2857_v42, %s2479_s3 }
 0x3e0   : > { %725 = vrot.lane.b32.xlu0 %v2857_v42, %s2480_s13 }
 0x3e3   : > { %v1076_v18 = vpop.xlane.xlu0 %1075 }
 0x3e4   : > { %2269 = vrcp.f32 %v1076_v18 }
 0x3e5   : > { %2271 = vpow2.f32 %v1072_v20  ;;  %v2135_v20 = vpack.c.bf16 %v1598_v19, %v1597_v17 }
 0x3ee   : > { %v2270_v21 = vpop.eup %2269 }
 0x3ef   : > { %v1090_v22 = vmul.f32 %v2270_v21, %v2264_v0  ;;  %v2272_v23 = vpop.eup %2271  ;;  %v1599_v21 = vld [vmem:[%s2786_s26 + $0x20] sm:$0xff] }
 0x3f0   : > { %v1083_v24 = vsel %vm743_vm3, %v2272_v23, 0.0 }
 0x3f1   : > { %2049 = vmatmul.mubr.msk.f32.vlgmr.msra.gmra.mrb[4].mxu0 %vm743_vm3, %v1090_v22  ;;  %v1600_v22 = vld [vmem:[%s2786_s26 + $0x28] sm:$0xff] }
 0x3f2   : > { %2058 = vmatprep.mubr.msk.f32.mxu0 %vm2476_vm1, %v2477_v8 }
 0x3fa   : > { %1084 = vadd.xlane.f32.xlu1 %v1083_v24 }
 0x40b   : > { %731 = vrot.lane.b32.xlu1 %v2857_v42, %s2481_s15 }
 0x452   : > { %v1079_v25 = vpop.xlane.xlu1 %1078 }
 0x453   : > { %2273 = vrcp.f32 %v1079_v25 }
 0x456   : > { %v729_v26 = vpop.permute.xlu1 %728 }
 0x457   : > { %v1082_v27 = vpop.xlane.xlu0 %1081  ;;  %2057 = vmatpush3.msra.mxu0 %v729_v26 }
 0x458   : > { %2275 = vrcp.f32 %v1082_v27  ;;  %2119 = vmatprep.subr.bf16.mxu0 %v2475_v5  ;;  %v1503_v27 = vsub.s32 4, %v2805_v9 }
 0x45b   : > { %v726_v28 = vpop.permute.xlu0 %725 }
 0x45c   : > { %2052 = vmatpush3.msra.mxu1 %v726_v28  ;;  %v1508_v28 = vsub.s32 5, %v2805_v9 }
 0x45d   : > { %v2274_v29 = vpop.eup %2273  ;;  %2061 = vmatprep.subr.mxu1 %v2477_v8 }
 0x45e   : > { %v1091_v30 = vmul.f32 %v2274_v29, %v2266_v12  ;;  %v1514_v12 = vld [vmem:[%s2751_s29 + $0x18] sm:$0xff]  ;;  %v1504_v29 = vrot.slane %v2815_v13, %v1503_v27 }
 0x460   : > { %2054 = vmatmul.mubr.msk.f32.vlgmr.msra.gmra.mrb[8].mxu1 %vm743_vm3, %v1091_v30 }
 0x461   : > { %2063 = vmatprep.mubr.msk.f32.mxu1 %vm2476_vm1, %v2477_v8 }
 0x462   : > { %v2276_v31 = vpop.eup %2275 }
 0x463   : > { %v1092_v32 = vmul.f32 %v2276_v31, %v2268_v15  ;;  %v1595_v15 = vld [vmem:[%s2786_s26] sm:$0xff] }
 0x464   : > { %v2132_v18 = vpack.c.bf16 %v1596_v16, %v1595_v15 }
 0x465   : > { %2059 = vmatmul.mubr.msk.f32.vlgmr.msra.gmra.mrb[6].mxu0 %vm743_vm3, %v1092_v32  ;;  %v1509_v32 = vrot.slane %v2815_v13, %v1508_v28 }
 0x466   : > { %2074 = vmatprep.mubr.msk.f32.mxu0 %vm2476_vm1, %v2477_v8  ;;  %2121 = vmatpush3.bf16.msra.mxu0 %v2120_v45 }
 0x467   : > { %2122 = vmatprep.subr.bf16.mxu0 %v2475_v5 }
 0x46a   : > { %2124 = vmatpush3.bf16.msra.mxu0 %v2123_v48 }
 0x46b   : > { %2131 = vmatprep.subr.bf16.mxu0 %v2475_v5 }
 0x487   : > { %v1085_v33 = vpop.xlane.xlu1 %1084 }
 0x488   : > { %2277 = vrcp.f32 %v1085_v33 }
 0x48b   : > { %v732_v34 = vpop.permute.xlu1 %731 }
 0x48c   : > { %2062 = vmatpush3.msra.mxu1 %v732_v34 }
 0x48d   : > { %2125 = vmatprep.subr.bf16.mxu1 %v2475_v5 }
 0x492   : > { %v2278_v35 = vpop.eup %2277 }
 0x493   : > { %v1093_v36 = vmul.f32 %v2278_v35, %v2272_v23  ;;  %v2138_v23 = vpack.c.bf16 %v1600_v22, %v1599_v21  ;;  %v1602_v35 = vld [vmem:[%s2786_s26 + $0x38] sm:$0xff] }
 0x495   : > { %2064 = vmatmul.mubr.msk.f32.vlgmr.msra.gmra.mrb[10].mxu1 %vm743_vm3, %v1093_v36 }
 0x496   : > { %2085 = vmatprep.mubr.msk.f32.mxu1 %vm2476_vm1, %v2477_v8  ;;  %2127 = vmatpush3.bf16.msra.mxu1 %v2126_v10 }
 0x497   : > { %2128 = vmatprep.subr.bf16.mxu1 %v2475_v5 }
 0x4c4   : > { %v1163_v37 = vpop.f32.mrb[4].mxu0 }
 0x4c5   : > { %v2050_v38 = vpop.f32.mrb[5].mxu0 }
 0x533   : > { %v1236_v39 = vpop.f32.mrb[8].mxu1 }
 0x534   : > { %1387 = vrot.lane.b32.xlu0 %v1236_v39, %s2483_s17  ;;  %v2055_v40 = vpop.f32.mrb[9].mxu1 }
 0x538   : > { %v1309_v41 = vpop.f32.mrb[6].mxu0 }
 0x539   : > { %1391 = vrot.lane.b32.xlu1 %v1309_v41, %s2484_s18  ;;  %v2060_v42 = vpop.f32.mrb[7].mxu0 }
 0x53a   : > { %v1605_v42 = vsub.s32 6, %v2805_v9 }
 0x53c   : > { %v1606_v43 = vrot.slane %v2815_v13, %v1605_v42 }
 0x568   : > { %v1382_v49 = vpop.f32.mrb[10].mxu1 }
 0x569   : > { %1395 = vrot.lane.b32.xlu0 %v1382_v49, %s2485_s30  ;;  %v2065_v50 = vpop.f32.mrb[11].mxu1 }
 0x5a6   : > { %v1388_v51 = vpop.permute.xlu0 %1387 }
 0x5a7   : > { %v1398_v53 = vsel %vm743_vm3, %v1163_v37, %v1388_v51  ;;  %v1945_v37 = vld [vmem:[%s530_s7] ss:$0 sm:$0xff]  ;;  %s3087_s7 = sld [smem:[#allocation19_spill]] }
 0x5ab   : > { %v1392_v52 = vpop.permute.xlu1 %1391 }
 0x5ac   : > { %v1400_v54 = vsel %vm1399_vm4, %v1398_v53, %v1392_v52 }
 0x5ad   : > { %p3089_p0 = scmp.ne.s32.totalorder %s3087_s7, 0 }
 0x5af   : > { %p2345_p7 = pnand %p2344_p10, %p3089_p0 }
 0x5b1   : > { %p2346_p9 = pneg %p2345_p7 }
 0x5db   : > { %v1396_v55 = vpop.permute.xlu0 %1395 }
 0x5dc   : > { %v1402_v56 = vsel %vm1401_vm5, %v1400_v54, %v1396_v55 }
 0x5dd   : > { %1403 = vst.msk [vmem:[#allocation2] sm:$0xff] %vm548_vm2, %v1402_v56 }
 0x5e4   : > { %v1404_v57 = vld [vmem:[#allocation2] sm:$0xff] }
 0x5e5   : > { %2075 = vmatmul.mubr.msk.f32.vlgmr.msra.gmra.mrb[8].mxu0 %vm548_vm2, %v1404_v57  ;;  %v1697_v57 = vsub.s32 7, %v2805_v9 }
 0x5e6   : > { %2104 = vmatprep.mubr.msk.f32.mxu0 %vm2476_vm1, %v2477_v8  ;;  %2133 = vmatpush3.bf16.msra.mxu0 %v2132_v18 }
 0x5e7   : > { %2134 = vmatprep.subr.bf16.mxu0 %v2475_v5  ;;  %v1698_v58 = vrot.slane %v2815_v13, %v1697_v57 }
 0x5ea   : > { %2136 = vmatpush3.bf16.msra.mxu0 %v2135_v20 }
 0x5eb   : > { %2137 = vmatprep.subr.bf16.mxu0 %v2475_v5 }
 0x5ee   : > { %2139 = vmatpush3.bf16.msra.mxu0 %v2138_v23 }
 0x5ef   : > { %2140 = vmatprep.subr.bf16.mxu0 %v2475_v5  ;;  %v1601_v5 = vld [vmem:[%s2786_s26 + $0x30] sm:$0xff]  ;;  %s1707_s26 = scalar_lea.sflag [#allocation5], %s2742_s23 }
 0x5f0   : > { %v2141_v36 = vpack.c.bf16 %v1602_v35, %v1601_v5 }
 0x5f2   : > { %2142 = vmatpush3.bf16.msra.mxu0 %v2141_v36 }
 0x6b8   : > { %v1482_v60 = vpop.f32.mrb[8].mxu0 }
 0x6b9   : > { %v1483_v61 = vadd.f32 %v1482_v60, %v1412_v59  ;;  %v2076_v62 = vpop.f32.mrb[9].mxu0 }
 0x6bb   : > { %v1486_v63 = vadd.f32 %v1483_v61, %v2811_v11  ;;  %v1513_v11 = vld [vmem:[%s2751_s29 + $0x10] sm:$0xff]  ;;  %v1948_v61 = vld [vmem:[%s2792_s2 + $0x8] ss:$0 sm:$0xff]  ;;  %s2486_s2 = smov [#allocation8]  }
 0x6bc   : > { %v2129_v14 = vpack.c.bf16 %v1514_v12, %v1513_v11  ;;  %s2347_s16 = sshll.u32 %s2486_s2, 4  ;;  %s2348_s16 = int_to_ptr.vmem [resolvable:$false] %s2347_s16 }
 0x6bd   : > { %v1487_v0 = vsel %vm548_vm2, %v1486_v63, 0.0  ;;  %s2349_s0 = scalar_lea.vmem %s2348_s16, 256  ;;  %p2350_p1 = scmp.lt.s32.totalorder %s2954_s20, %s2348_s16 }
 0x6be   : > { %1488 = vadd.xlane.f32.xlu1 %v1487_v0  ;;  %2130 = vmatpush3.bf16.msra.mxu1 %v2129_v14  ;;  %p2351_p4 = scmp.lt.s32.totalorder %s2349_s0, %s2343_s24 }
 0x6c0   : > { %p2352_p11 = por %p2351_p4, %p2350_p1 }
 0x6c2   : > { %p2353_p3 = pnand %p2352_p11, %p2346_p9 }
 0x74b   : > { %v1489_v1 = vpop.xlane.xlu1 %1488 }
 0x74c   : > { %v1491_v2 = vmul.f32 0.03125, %v1489_v1 }
 0x74e   : > { %v1492_v8 = vsub.f32 %v1486_v63, %v1491_v2 }
 0x750   : > { %v1493_v3 = vmul.f32 %v1492_v8, %v1492_v8 }
 0x752   : > { %v1494_v4 = vsel %vm548_vm2, %v1493_v3, 0.0 }
 0x753   : > { %1495 = vadd.xlane.f32.xlu0 %v1494_v4 }
 0x7e0   : > { %v1496_v24 = vpop.xlane.xlu0 %1495 }
 0x7e1   : > { %v1497_v25 = vmul.f32 0.03125, %v1496_v24 }
 0x7e3   : > { %v1498_v26 = vadd.f32 1e-05, %v1497_v25 }
 0x7e5   : > { %2279 = vrsqrt.f32 %v1498_v26 }
 0x7ef   : > { %v2280_v30 = vpop.eup %2279 }
 0x7f0   : > { %v1500_v31 = vmul.f32 %v2280_v30, %v1492_v8 }
 0x7f2   : > { %v1505_v33 = vmul.f32 %v1504_v29, %v1500_v31 }
 0x7f4   : > { %v1510_v34 = vadd.f32 %v1509_v32, %v1505_v33 }
 0x7f6   : > { %2086 = vmatmul.mubr.msk.f32.vlgmr.msra.gmra.mrb[12].mxu1 %vm548_vm2, %v1510_v34 }
 0x8c9   : > { %v1590_v38 = vpop.f32.mrb[12].mxu1 }
 0x8ca   : > { %v1591_v39 = vadd.f32 %v1945_v37, %v1590_v38  ;;  %v2087_v40 = vpop.f32.mrb[13].mxu1 }
 0x8cc   : > { %v1594_v41 = vmax.f32 %v1591_v39, 0.0 }
 0x8ce   : > { %2105 = vmatmul.mubr.msk.f32.vlgmr.msra.gmra.mrb[10].mxu0 %vm1607_vm6, %v1594_v41 }
 0x9a1   : > { %v1677_v44 = vpop.f32.mrb[10].mxu0 }
 0x9a2   : > { %v1678_v45 = vadd.f32 %v1677_v44, %v1606_v43  ;;  %v2106_v46 = vpop.f32.mrb[11].mxu0 }
 0x9a4   : > { %v1681_v47 = vadd.f32 %v1678_v45, %v1510_v34 }
 0x9a6   : > { %v1682_v48 = vsel %vm548_vm2, %v1681_v47, 0.0 }
 0x9a7   : > { %1683 = vadd.xlane.f32.xlu0 %v1682_v48 }
 0xa34   : > { %v1684_v49 = vpop.xlane.xlu0 %1683 }
 0xa35   : > { %v1685_v50 = vmul.f32 0.03125, %v1684_v49 }
 0xa37   : > { %v1686_v51 = vsub.f32 %v1681_v47, %v1685_v50 }
 0xa39   : > { %v1687_v52 = vmul.f32 %v1686_v51, %v1686_v51 }
 0xa3b   : > { %v1688_v53 = vsel %vm548_vm2, %v1687_v52, 0.0 }
 0xa3c   : > { %1689 = vadd.xlane.f32.xlu1 %v1688_v53 }
 0xac9   : > { %v1690_v54 = vpop.xlane.xlu1 %1689 }
 0xaca   : > { %v1691_v55 = vmul.f32 0.03125, %v1690_v54 }
 0xacc   : > { %v1692_v56 = vadd.f32 1e-05, %v1691_v55 }
 0xace   : > { %2281 = vrsqrt.f32 %v1692_v56 }
 0xad8   : > { %v2282_v59 = vpop.eup %2281 }
 0xad9   : > { %v1694_v60 = vmul.f32 %v2282_v59, %v1686_v51 }
 0xadb   : > { %v1699_v62 = vmul.f32 %v1698_v58, %v1694_v60 }
 0xadd   : > { %v1704_v63 = vadd.f32 %v1948_v61, %v1699_v62 }
 0xadf   : > { %1705 = vst.msk [vmem:[%s2798_s11] sm:$0xff] %vm548_vm2, %v1704_v63 }
 0xae0   : > { %2356 = shalt.err (!%p2353_p3)
}
 0xae1   : > { %s2357_s11 = scalar_lea.hbm %s2952_s8, 128  ;;  %s2361_s9 = scalar_lea.hbm %s3088_s25, 256 }
 0xae2   : > { %p2358_p12 = scmp.ne.s32.totalorder %s2952_s8, %s2357_s11  ;;  %p2362_p6 = scmp.lt.u32.totalorder %s2952_s8, %s3088_s25 }
 0xae3   : > { %p2363_p8 = scmp.lt.u32.totalorder %s2361_s9, %s2357_s11  ;;  %p2365_p10 = scmp.lt.u32.totalorder %s2357_s11, %s2952_s8 }
 0xae4   : > { %p2359_p5 = pnand %p2358_p12, %p3089_p0 }
 0xae5   : > { %p2364_p13 = por %p2363_p8, %p2362_p6 }
 0xae6   : > { %p2360_p2 = pneg %p2359_p5 }
 0xae7   : > { %p2366_p7 = por %p2365_p10, %p2364_p13 }
 0xae9   : > { %p2367_p9 = pnand %p2366_p7, %p2360_p2 }
 0xaeb   : > { %2370 = shalt.err (!%p2367_p9)
}
 0xaec   : > { %2147 = dma.vmem_to_hbm [thread:$0]  (%p3089_p0), %s2954_s20, 128, %s2952_s8, %s1707_s26  }
 0xaed PF: > { %s3090_s3 = sld [smem:[#allocation18_spill]]  ;;  %s3091_s13 = sld [smem:[#allocation13_spill]] }
 0xaee   : > { %s3092_s15 = sld [smem:[#allocation20_spill]] }
 0xaf3   : > { %p2161_p1 = scmp.ge.s32.totalorder %s3090_s3, 2  ;;  %s1732_s5 = sand.u32 1, %s3091_s13  }
 0xaf4   : > { %p3093_p4 = scmp.ne.s32.totalorder %s3092_s15, 0  ;;  %s1733_s17 = scalar_lea.sflag [#allocation5], %s1732_s5 }
 0xaf6   : > { %p2157_p11 = pnand %p2161_p1, %p3093_p4 }
 0xaf8   : > { %2424 = dma.done.wait (!%p2157_p11), %s1733_s17, 128  }
 0xaf9   : > { %2426 = vsyncadd (!%p2157_p11), %s1733_s17, 4294967168  ;;  %s28_s19 = sadd.s32 1, %s3090_s3   ;;  %s3094_s18 = sld [smem:[#allocation12_spill]] }
 0xafa   : > { %p25_p3 = scmp.ge.s32.totalorder %s28_s19, 6   ;;  %s3095_s11 = sld [smem:[#allocation23_spill]] }
 0xafb   : > { %s3096_s12 = sld [smem:[#allocation14_spill]]  ;;  %s3097_s13 = sld [smem:[#allocation15_spill]] }
 0xafc   : > { %s3098_s14 = sld [smem:[#allocation24_spill]]  ;;  %s3099_s15 = sld [smem:[#allocation16_spill]] }
 0xafd   : > { %s3100_s16 = sld [smem:[#allocation17_spill]]  ;;  %s3101_s17 = sld [smem:[#allocation21_spill]] }
 0xafe   : > { %s3102_s28 = sld [smem:[#allocation22_spill]]  ;;  %s3103_s30 = smov %s2433_s10 }
 0xaff   : > { %s3104_s10 = smov %s3094_s18  ;;  %27 = sbr.rel (!%p25_p3) target bundleno = 20 (0x14), region = 139 }
 0xb04   : > { %s3105_s18 = smov %s3102_s28 }
 0xb06   :  { %1738 = vsyncpa [#allocation4], 1 }
 0xb07   :  { %1740 = vsyncpa [#allocation4 + $0x1], 1 }
 0xb08   :  { %1741 = vsyncpa [#allocation7], 1 }
 0xb09   :  { %1743 = vsyncpa [#allocation7 + $0x1], 1 }
 0xb0a   :  { %1744 = vsyncpa [#allocation5], 1 }
 0xb0b   :  { %1746 = vsyncpa [#allocation5 + $0x1], 1 }

</bundles_post_ra>
